<compile_context>
chip_gen: v5e
topology: v5e:2x2
jax: 0.10.0
libtpu: 0.0.40
codegen_flags: <defaults>
</compile_context>

<pallas_src>
import jax
import jax.numpy as jnp
from jax import lax
from jax.experimental import pallas as pl
from jax.experimental.pallas import tpu as pltpu

FPAD = 128  # lane-dense padded feature width


def _gat_conv(h_src, h_dst, mbias, m01, w_bf, a_l, w_ar, bias, w_res_bf):
    """Fused dense single-head GATConv, dst-major (DGL semantics, eval mode).

    h_src [Ns,FPAD] f32, h_dst [Nd,FPAD] f32, mbias/m01 [Nd,Ns] f32 (dst x src),
    w_bf / w_res_bf [FPAD,FPAD] bf16, a_l / w_ar / bias [1,FPAD] f32.
    Returns updated dst features [Nd,FPAD] f32 (padding lanes stay exactly 0).
    """
    # Shared fc projection of source features (dst projection folded into w_ar).
    z = jnp.dot(h_src.astype(jnp.bfloat16), w_bf,
                preferred_element_type=jnp.float32)                    # [Ns, F] f32
    z_bf = z.astype(jnp.bfloat16)

    # el[1, Ns] = a_l . z_src — lane-axis contraction on the MXU (no z transpose).
    el = lax.dot_general(a_l.astype(jnp.bfloat16), z_bf,
                         dimension_numbers=(((1,), (1,)), ((), ())),
                         preferred_element_type=jnp.float32)            # [1, Ns]
    er = jnp.sum(h_dst * w_ar, axis=-1, keepdims=True)                  # [Nd, 1]
    e = er + el                                                         # [Nd, Ns]
    e = jnp.where(e > 0, e, 0.2 * e)                                    # LeakyReLU(0.2)
    e = e + mbias                                                       # additive edge mask

    # Edge softmax over incoming edges of each dst node (lane axis).
    e_max = jnp.max(e, axis=-1, keepdims=True)                          # [Nd, 1]
    p = jnp.exp(e - e_max) * m01                                        # masked probs
    denom = jnp.sum(p, axis=-1, keepdims=True)                          # [Nd, 1]
    inv = pl.reciprocal(jnp.where(denom > 0, denom, 1.0), approx=True)  # 0-indeg guard
    alpha = (p * inv).astype(jnp.bfloat16)                              # attn_drop = 0

    # Message aggregation: canonical [Nd,Ns] @ [Ns,F] MXU matmul.
    rst = jnp.dot(alpha, z_bf, preferred_element_type=jnp.float32)      # [Nd, F]

    # Residual (res_fc, bias=False; identity specialized at trace time) + bias.
    if w_res_bf is None:
        res = h_dst
    else:
        res = jnp.dot(h_dst.astype(jnp.bfloat16), w_res_bf,
                      preferred_element_type=jnp.float32)
    out = rst + res + bias
    # ELU(alpha=1), overflow-safe for the untaken branch.
    return jnp.where(out > 0, out, jnp.exp(jnp.minimum(out, 0.0)) - 1.0)


def _make_fused_kernel(has_res, res_idx, n_layers):
    """has_res[c]: conv c has a residual weight; res_idx[c]: its slab index."""
    any_res = any(has_res)

    def kernel(*refs):
        img_ref, txt_ref, mit_ref, mti_ref, w_ref, vec_ref = refs[:6]
        wres_ref = refs[6] if any_res else None
        out_img_ref, out_txt_ref = refs[-2:]

        img = img_ref[...]                          # [N_img, FPAD]
        txt = txt_ref[...]                          # [N_txt, FPAD]
        mb_it, m01_it = mit_ref[0], mit_ref[1]      # image_edge, dst-major [N_txt, N_img]
        mb_ti, m01_ti = mti_ref[0], mti_ref[1]      # text_edge,  dst-major [N_img, N_txt]

        def conv_params(c):                         # c is a static Python int
            w_bf = w_ref[c]                         # [FPAD, FPAD] bf16
            vecs = vec_ref[c]                       # [8, FPAD] f32
            a_l, w_ar, bias = vecs[0:1, :], vecs[1:2, :], vecs[2:3, :]
            w_res = wres_ref[res_idx[c]] if has_res[c] else None
            return w_bf, a_l, w_ar, bias, w_res

        for layer in range(n_layers):
            # 'image_edge': image_node -> text_node (updates text nodes).
            new_txt = _gat_conv(img, txt, mb_it, m01_it, *conv_params(2 * layer))
            # 'text_edge': text_node -> image_node (updates image nodes).
            new_img = _gat_conv(txt, img, mb_ti, m01_ti, *conv_params(2 * layer + 1))
            # HeteroGraphConv(aggregate='mean'): each dst type receives exactly one
            # edge-type contribution, so the mean is the value itself.
            # torch.mean(val, dim=1) over num_heads=1 is folded (squeezed).
            img, txt = new_img, new_txt

        out_img_ref[...] = img
        out_txt_ref[...] = txt

    return kernel


def _pad2(x, rows, cols):
    r, c = x.shape
    return jnp.pad(x, ((0, rows - r), (0, cols - c)))


def hetero_embedding_forward(feats, adj_img2txt, adj_txt2img, layer_params):
    """Full HeteroEmbeddingLayer forward as a single fused pallas_call."""
    # TODO(synk): self.mm_embedding_space is not defined in the provided module
    # source; treated as identity here.
    img = feats["image_node"].astype(jnp.float32)
    txt = feats["text_node"].astype(jnp.float32)
    n_img, n_txt = img.shape[0], txt.shape[0]
    n_layers = len(layer_params)

    # dst-major edge masks (dst x src), stacked [additive bias; 0/1 multiplier].
    def masks(adj_src_dst):
        a = (jnp.asarray(adj_src_dst) > 0).astype(jnp.float32).T   # [Nd, Ns]
        return jnp.stack([(a - 1.0) * 1e30, a])                    # [2, Nd, Ns]

    mask_it = masks(adj_img2txt)   # image_edge: img -> txt, dst = text  -> [2, n_txt, n_img]
    mask_ti = masks(adj_txt2img)   # text_edge:  txt -> img, dst = image -> [2, n_img, n_txt]

    # Parameter slabs (conv order: layer0 image_edge, layer0 text_edge, layer1 ...).
    w_blocks, vec_blocks, res_blocks = [], [], []
    has_res, res_idx = [], []
    for p in layer_params:
        for et in ("image_edge", "text_edge"):
            q = p[et]
            w_blocks.append(_pad2(q["w"], FPAD, FPAD).astype(jnp.bfloat16))
            # Fold attn_r into W: er = h_dst @ (W @ a_r^T)  (kills the z_dst matmul).
            # Note: DGL GATConv with scalar in_feats shares one fc for src and dst,
            # so the shared projection + this fold match the reference.
            w_ar = (q["w"] @ q["attn_r"].T).T                       # [1, f_in]
            vec = jnp.zeros((8, FPAD), jnp.float32)
            vec = vec.at[0, : q["attn_l"].shape[1]].set(q["attn_l"][0])
            vec = vec.at[1, : w_ar.shape[1]].set(w_ar[0])
            vec = vec.at[2, : q["bias"].shape[1]].set(q["bias"][0])
            vec_blocks.append(vec)
            if q["w_res"] is None:       # identity residual (f_in == f_out)
                has_res.append(False)
                res_idx.append(-1)
            else:
                has_res.append(True)
                res_idx.append(len(res_blocks))
                res_blocks.append(_pad2(q["w_res"], FPAD, FPAD).astype(jnp.bfloat16))

    inputs = [_pad2(img, n_img, FPAD), _pad2(txt, n_txt, FPAD),
              mask_it, mask_ti,
              jnp.stack(w_blocks),             # [C, 128, 128] bf16
              jnp.stack(vec_blocks)]           # [C, 8, 128]   f32  (attn_l / w_ar / bias)
    if res_blocks:
        inputs.append(jnp.stack(res_blocks))   # [R, 128, 128] bf16

    f_out_last = layer_params[-1]["image_edge"]["w"].shape[1]
    vmem = pl.BlockSpec(memory_space=pltpu.MemorySpace.VMEM)
    out_img_p, out_txt_p = pl.pallas_call(
        _make_fused_kernel(tuple(has_res), tuple(res_idx), n_layers),
        out_shape=(jax.ShapeDtypeStruct((n_img, FPAD), jnp.float32),
                   jax.ShapeDtypeStruct((n_txt, FPAD), jnp.float32)),
        in_specs=[vmem] * len(inputs),
        out_specs=(vmem, vmem),
        # TODO(synk): at realistic graph sizes add a dst-tiled grid with
        # dimension_semantics=("parallel",) so v7x's second TensorCore is used and
        # the dense [Nd,Ns] attention intermediates stay under v7x's 64 MiB VMEM.
        compiler_params=pltpu.CompilerParams(vmem_limit_bytes=32 * 1024 * 1024),
    )(*inputs)
    # Slice away the lane padding (> real out_feats of the last layer).
    return {"image_node": out_img_p[:, :f_out_last],
            "text_node": out_txt_p[:, :f_out_last]}


def init_gat_params(key, f_in, f_out):
    k1, k2, k3, k4 = jax.random.split(key, 4)
    scale = 1.0 / jnp.sqrt(jnp.float32(f_in))
    w = jax.random.normal(k1, (f_in, f_out), jnp.float32) * scale
    attn_l = jax.random.normal(k2, (1, f_out), jnp.float32) * 0.1
    attn_r = jax.random.normal(k3, (1, f_out), jnp.float32) * 0.1
    bias = jnp.zeros((1, f_out), jnp.float32)
    # DGL GATConv uses an Identity residual when in_feats == num_heads*out_feats;
    # that case is specialized at trace time (w_res=None => no matmul emitted).
    w_res = None if f_in == f_out else (
        jax.random.normal(k4, (f_in, f_out), jnp.float32) * scale)
    return dict(w=w, attn_l=attn_l, attn_r=attn_r, bias=bias, w_res=w_res)


def make_adj(n_src, n_dst):
    row = jnp.arange(n_src)[:, None]
    col = jnp.arange(n_dst)[None, :]
    # Deterministic pattern; (row % n_dst == col) guarantees in-degree >= 1
    # (the kernel also guards zero in-degree explicitly).
    adj = ((row + 2 * col) % 3 == 0) | ((row % n_dst) == col)
    return adj.astype(jnp.int8)


if __name__ == "__main__":
    key = jax.random.PRNGKey(0)
    k_img, k_txt, k_par = jax.random.split(key, 3)

    n_img, n_txt = 16, 16
    in_feats = [32, 16]
    out_feats = [16, 8]

    feats = {
        "image_node": jax.random.normal(k_img, (n_img, in_feats[0]), jnp.float32),
        "text_node": jax.random.normal(k_txt, (n_txt, in_feats[0]), jnp.float32),
    }
    adj_img2txt = make_adj(n_img, n_txt)   # 'image_edge': image -> text
    adj_txt2img = make_adj(n_txt, n_img)   # 'text_edge':  text  -> image

    layer_params = []
    keys = jax.random.split(k_par, 2 * len(in_feats))
    for i in range(len(in_feats)):
        layer_params.append({
            "image_edge": init_gat_params(keys[2 * i], in_feats[i], out_feats[i]),
            "text_edge": init_gat_params(keys[2 * i + 1], in_feats[i], out_feats[i]),
        })

    out = hetero_embedding_forward(feats, adj_img2txt, adj_txt2img, layer_params)
    jax.block_until_ready(out)

    assert out["image_node"].shape == (n_img, out_feats[-1])
    assert out["text_node"].shape == (n_txt, out_feats[-1])
    assert jnp.all(jnp.isfinite(out["image_node"]))
    assert jnp.all(jnp.isfinite(out["text_node"]))
    print("KERNEL_OK")
</pallas_src>

<mosaic_0001>
module attributes {stable_mosaic.version = 11 : i64} {
  func.func @kernel(%arg0: memref<16x128xf32, #tpu.memory_space<vmem>>, %arg1: memref<16x128xf32, #tpu.memory_space<vmem>>, %arg2: memref<2x16x16xf32, #tpu.memory_space<vmem>>, %arg3: memref<2x16x16xf32, #tpu.memory_space<vmem>>, %arg4: memref<4x128x128xbf16, #tpu.memory_space<vmem>>, %arg5: memref<4x8x128xf32, #tpu.memory_space<vmem>>, %arg6: memref<4x128x128xbf16, #tpu.memory_space<vmem>>, %arg7: memref<16x128xf32, #tpu.memory_space<vmem>>, %arg8: memref<16x128xf32, #tpu.memory_space<vmem>>) attributes {dimension_semantics = [], scalar_prefetch = 0 : i64, scratch_operands = 0 : i64, tpu.core_type = #tpu.core_type<tc>} {
    %c0 = arith.constant 0 : index
    %c0_0 = arith.constant 0 : index
    %0 = vector.load %arg0[%c0, %c0_0] : memref<16x128xf32, #tpu.memory_space<vmem>>, vector<16x128xf32>
    %c0_1 = arith.constant 0 : index
    %c0_2 = arith.constant 0 : index
    %1 = vector.load %arg1[%c0_1, %c0_2] : memref<16x128xf32, #tpu.memory_space<vmem>>, vector<16x128xf32>
    %c0_3 = arith.constant 0 : index
    %c0_4 = arith.constant 0 : index
    %c0_5 = arith.constant 0 : index
    %2 = vector.load %arg2[%c0_3, %c0_4, %c0_5] : memref<2x16x16xf32, #tpu.memory_space<vmem>>, vector<1x16x16xf32>
    %3 = vector.shape_cast %2 : vector<1x16x16xf32> to vector<16x16xf32>
    %c1 = arith.constant 1 : index
    %c0_6 = arith.constant 0 : index
    %c0_7 = arith.constant 0 : index
    %4 = vector.load %arg2[%c1, %c0_6, %c0_7] : memref<2x16x16xf32, #tpu.memory_space<vmem>>, vector<1x16x16xf32>
    %5 = vector.shape_cast %4 : vector<1x16x16xf32> to vector<16x16xf32>
    %c0_8 = arith.constant 0 : index
    %c0_9 = arith.constant 0 : index
    %c0_10 = arith.constant 0 : index
    %6 = vector.load %arg3[%c0_8, %c0_9, %c0_10] : memref<2x16x16xf32, #tpu.memory_space<vmem>>, vector<1x16x16xf32>
    %7 = vector.shape_cast %6 : vector<1x16x16xf32> to vector<16x16xf32>
    %c1_11 = arith.constant 1 : index
    %c0_12 = arith.constant 0 : index
    %c0_13 = arith.constant 0 : index
    %8 = vector.load %arg3[%c1_11, %c0_12, %c0_13] : memref<2x16x16xf32, #tpu.memory_space<vmem>>, vector<1x16x16xf32>
    %9 = vector.shape_cast %8 : vector<1x16x16xf32> to vector<16x16xf32>
    %c0_14 = arith.constant 0 : index
    %c0_15 = arith.constant 0 : index
    %c0_16 = arith.constant 0 : index
    %10 = vector.load %arg4[%c0_14, %c0_15, %c0_16] : memref<4x128x128xbf16, #tpu.memory_space<vmem>>, vector<1x128x128xbf16>
    %11 = vector.shape_cast %10 : vector<1x128x128xbf16> to vector<128x128xbf16>
    %c0_17 = arith.constant 0 : index
    %c0_18 = arith.constant 0 : index
    %c0_19 = arith.constant 0 : index
    %12 = vector.load %arg5[%c0_17, %c0_18, %c0_19] : memref<4x8x128xf32, #tpu.memory_space<vmem>>, vector<1x8x128xf32>
    %13 = vector.shape_cast %12 : vector<1x8x128xf32> to vector<8x128xf32>
    %14 = vector.extract_strided_slice %13 {offsets = [0, 0], sizes = [1, 128], strides = [1, 1]} : vector<8x128xf32> to vector<1x128xf32>
    %15 = vector.extract_strided_slice %13 {offsets = [1, 0], sizes = [1, 128], strides = [1, 1]} : vector<8x128xf32> to vector<1x128xf32>
    %16 = vector.extract_strided_slice %13 {offsets = [2, 0], sizes = [1, 128], strides = [1, 1]} : vector<8x128xf32> to vector<1x128xf32>
    %c0_20 = arith.constant 0 : index
    %c0_21 = arith.constant 0 : index
    %c0_22 = arith.constant 0 : index
    %17 = vector.load %arg6[%c0_20, %c0_21, %c0_22] : memref<4x128x128xbf16, #tpu.memory_space<vmem>>, vector<1x128x128xbf16>
    %18 = vector.shape_cast %17 : vector<1x128x128xbf16> to vector<128x128xbf16>
    %19 = arith.truncf %0 : vector<16x128xf32> to vector<16x128xbf16>
    %cst = arith.constant dense<0.000000e+00> : vector<16x128xf32>
    %20 = tpu.matmul %19, %11, %cst {dimension_numbers = #tpu.dot_dimension_numbers<[1], [0], [0], [1], [0, 0, 1, 1], [], []>} : vector<16x128xbf16>, vector<128x128xbf16>, vector<16x128xf32> -> vector<16x128xf32>
    %21 = arith.truncf %20 : vector<16x128xf32> to vector<16x128xbf16>
    %22 = arith.truncf %14 : vector<1x128xf32> to vector<1x128xbf16>
    %cst_23 = arith.constant dense<0.000000e+00> : vector<1x16xf32>
    %23 = tpu.matmul %22, %21, %cst_23 {dimension_numbers = #tpu.dot_dimension_numbers<[1], [1], [0], [0], [0, 0, 1, 0], [], []>} : vector<1x128xbf16>, vector<16x128xbf16>, vector<1x16xf32> -> vector<1x16xf32>
    %24 = vector.broadcast %15 : vector<1x128xf32> to vector<16x128xf32>
    %25 = arith.mulf %1, %24 : vector<16x128xf32>
    %cst_24 = arith.constant dense<0.000000e+00> : vector<16xf32>
    %26 = vector.multi_reduction <add>, %25, %cst_24 [1] : vector<16x128xf32> to vector<16xf32>
    %27 = vector.shape_cast %26 : vector<16xf32> to vector<16x1xf32>
    %28 = vector.broadcast %27 : vector<16x1xf32> to vector<16x16xf32>
    %29 = vector.broadcast %23 : vector<1x16xf32> to vector<16x16xf32>
    %30 = arith.addf %28, %29 : vector<16x16xf32>
    %cst_25 = arith.constant 0.000000e+00 : f32
    %31 = vector.broadcast %cst_25 : f32 to vector<16x16xf32>
    %32 = arith.cmpf ogt, %30, %31 : vector<16x16xf32>
    %cst_26 = arith.constant 2.000000e-01 : f32
    %33 = vector.broadcast %cst_26 : f32 to vector<16x16xf32>
    %34 = arith.mulf %33, %30 : vector<16x16xf32>
    %35 = arith.select %32, %30, %34 : vector<16x16xi1>, vector<16x16xf32>
    %36 = arith.addf %35, %3 : vector<16x16xf32>
    %cst_27 = arith.constant dense<0xFF800000> : vector<16xf32>
    %37 = vector.multi_reduction <maximumf>, %36, %cst_27 [1] : vector<16x16xf32> to vector<16xf32>
    %38 = vector.shape_cast %37 : vector<16xf32> to vector<16x1xf32>
    %39 = vector.broadcast %38 : vector<16x1xf32> to vector<16x16xf32>
    %40 = arith.subf %36, %39 : vector<16x16xf32>
    %41 = math.exp %40 : vector<16x16xf32>
    %42 = arith.mulf %41, %5 : vector<16x16xf32>
    %cst_28 = arith.constant dense<0.000000e+00> : vector<16xf32>
    %43 = vector.multi_reduction <add>, %42, %cst_28 [1] : vector<16x16xf32> to vector<16xf32>
    %44 = vector.shape_cast %43 : vector<16xf32> to vector<16x1xf32>
    %cst_29 = arith.constant 0.000000e+00 : f32
    %45 = vector.broadcast %cst_29 : f32 to vector<16x1xf32>
    %46 = arith.cmpf ogt, %44, %45 : vector<16x1xf32>
    %cst_30 = arith.constant 1.000000e+00 : f32
    %47 = vector.broadcast %cst_30 : f32 to vector<16x1xf32>
    %48 = arith.select %46, %44, %47 : vector<16x1xi1>, vector<16x1xf32>
    %49 = tpu.reciprocal %48 {approx = true} : vector<16x1xf32> -> vector<16x1xf32>
    %50 = vector.broadcast %49 : vector<16x1xf32> to vector<16x16xf32>
    %51 = arith.mulf %42, %50 : vector<16x16xf32>
    %52 = arith.truncf %51 : vector<16x16xf32> to vector<16x16xbf16>
    %cst_31 = arith.constant dense<0.000000e+00> : vector<16x128xf32>
    %53 = tpu.matmul %52, %21, %cst_31 {dimension_numbers = #tpu.dot_dimension_numbers<[1], [0], [0], [1], [0, 0, 1, 1], [], []>} : vector<16x16xbf16>, vector<16x128xbf16>, vector<16x128xf32> -> vector<16x128xf32>
    %54 = arith.truncf %1 : vector<16x128xf32> to vector<16x128xbf16>
    %cst_32 = arith.constant dense<0.000000e+00> : vector<16x128xf32>
    %55 = tpu.matmul %54, %18, %cst_32 {dimension_numbers = #tpu.dot_dimension_numbers<[1], [0], [0], [1], [0, 0, 1, 1], [], []>} : vector<16x128xbf16>, vector<128x128xbf16>, vector<16x128xf32> -> vector<16x128xf32>
    %56 = arith.addf %53, %55 : vector<16x128xf32>
    %57 = vector.broadcast %16 : vector<1x128xf32> to vector<16x128xf32>
    %58 = arith.addf %56, %57 : vector<16x128xf32>
    %cst_33 = arith.constant 0.000000e+00 : f32
    %59 = vector.broadcast %cst_33 : f32 to vector<16x128xf32>
    %60 = arith.cmpf ogt, %58, %59 : vector<16x128xf32>
    %cst_34 = arith.constant 0.000000e+00 : f32
    %61 = vector.broadcast %cst_34 : f32 to vector<16x128xf32>
    %62 = arith.minimumf %58, %61 : vector<16x128xf32>
    %63 = math.exp %62 : vector<16x128xf32>
    %cst_35 = arith.constant 1.000000e+00 : f32
    %64 = vector.broadcast %cst_35 : f32 to vector<16x128xf32>
    %65 = arith.subf %63, %64 : vector<16x128xf32>
    %66 = arith.select %60, %58, %65 : vector<16x128xi1>, vector<16x128xf32>
    %c1_36 = arith.constant 1 : index
    %c0_37 = arith.constant 0 : index
    %c0_38 = arith.constant 0 : index
    %67 = vector.load %arg4[%c1_36, %c0_37, %c0_38] : memref<4x128x128xbf16, #tpu.memory_space<vmem>>, vector<1x128x128xbf16>
    %68 = vector.shape_cast %67 : vector<1x128x128xbf16> to vector<128x128xbf16>
    %c1_39 = arith.constant 1 : index
    %c0_40 = arith.constant 0 : index
    %c0_41 = arith.constant 0 : index
    %69 = vector.load %arg5[%c1_39, %c0_40, %c0_41] : memref<4x8x128xf32, #tpu.memory_space<vmem>>, vector<1x8x128xf32>
    %70 = vector.shape_cast %69 : vector<1x8x128xf32> to vector<8x128xf32>
    %71 = vector.extract_strided_slice %70 {offsets = [0, 0], sizes = [1, 128], strides = [1, 1]} : vector<8x128xf32> to vector<1x128xf32>
    %72 = vector.extract_strided_slice %70 {offsets = [1, 0], sizes = [1, 128], strides = [1, 1]} : vector<8x128xf32> to vector<1x128xf32>
    %73 = vector.extract_strided_slice %70 {offsets = [2, 0], sizes = [1, 128], strides = [1, 1]} : vector<8x128xf32> to vector<1x128xf32>
    %c1_42 = arith.constant 1 : index
    %c0_43 = arith.constant 0 : index
    %c0_44 = arith.constant 0 : index
    %74 = vector.load %arg6[%c1_42, %c0_43, %c0_44] : memref<4x128x128xbf16, #tpu.memory_space<vmem>>, vector<1x128x128xbf16>
    %75 = vector.shape_cast %74 : vector<1x128x128xbf16> to vector<128x128xbf16>
    %76 = arith.truncf %1 : vector<16x128xf32> to vector<16x128xbf16>
    %cst_45 = arith.constant dense<0.000000e+00> : vector<16x128xf32>
    %77 = tpu.matmul %76, %68, %cst_45 {dimension_numbers = #tpu.dot_dimension_numbers<[1], [0], [0], [1], [0, 0, 1, 1], [], []>} : vector<16x128xbf16>, vector<128x128xbf16>, vector<16x128xf32> -> vector<16x128xf32>
    %78 = arith.truncf %77 : vector<16x128xf32> to vector<16x128xbf16>
    %79 = arith.truncf %71 : vector<1x128xf32> to vector<1x128xbf16>
    %cst_46 = arith.constant dense<0.000000e+00> : vector<1x16xf32>
    %80 = tpu.matmul %79, %78, %cst_46 {dimension_numbers = #tpu.dot_dimension_numbers<[1], [1], [0], [0], [0, 0, 1, 0], [], []>} : vector<1x128xbf16>, vector<16x128xbf16>, vector<1x16xf32> -> vector<1x16xf32>
    %81 = vector.broadcast %72 : vector<1x128xf32> to vector<16x128xf32>
    %82 = arith.mulf %0, %81 : vector<16x128xf32>
    %cst_47 = arith.constant dense<0.000000e+00> : vector<16xf32>
    %83 = vector.multi_reduction <add>, %82, %cst_47 [1] : vector<16x128xf32> to vector<16xf32>
    %84 = vector.shape_cast %83 : vector<16xf32> to vector<16x1xf32>
    %85 = vector.broadcast %84 : vector<16x1xf32> to vector<16x16xf32>
    %86 = vector.broadcast %80 : vector<1x16xf32> to vector<16x16xf32>
    %87 = arith.addf %85, %86 : vector<16x16xf32>
    %cst_48 = arith.constant 0.000000e+00 : f32
    %88 = vector.broadcast %cst_48 : f32 to vector<16x16xf32>
    %89 = arith.cmpf ogt, %87, %88 : vector<16x16xf32>
    %cst_49 = arith.constant 2.000000e-01 : f32
    %90 = vector.broadcast %cst_49 : f32 to vector<16x16xf32>
    %91 = arith.mulf %90, %87 : vector<16x16xf32>
    %92 = arith.select %89, %87, %91 : vector<16x16xi1>, vector<16x16xf32>
    %93 = arith.addf %92, %7 : vector<16x16xf32>
    %cst_50 = arith.constant dense<0xFF800000> : vector<16xf32>
    %94 = vector.multi_reduction <maximumf>, %93, %cst_50 [1] : vector<16x16xf32> to vector<16xf32>
    %95 = vector.shape_cast %94 : vector<16xf32> to vector<16x1xf32>
    %96 = vector.broadcast %95 : vector<16x1xf32> to vector<16x16xf32>
    %97 = arith.subf %93, %96 : vector<16x16xf32>
    %98 = math.exp %97 : vector<16x16xf32>
    %99 = arith.mulf %98, %9 : vector<16x16xf32>
    %cst_51 = arith.constant dense<0.000000e+00> : vector<16xf32>
    %100 = vector.multi_reduction <add>, %99, %cst_51 [1] : vector<16x16xf32> to vector<16xf32>
    %101 = vector.shape_cast %100 : vector<16xf32> to vector<16x1xf32>
    %cst_52 = arith.constant 0.000000e+00 : f32
    %102 = vector.broadcast %cst_52 : f32 to vector<16x1xf32>
    %103 = arith.cmpf ogt, %101, %102 : vector<16x1xf32>
    %cst_53 = arith.constant 1.000000e+00 : f32
    %104 = vector.broadcast %cst_53 : f32 to vector<16x1xf32>
    %105 = arith.select %103, %101, %104 : vector<16x1xi1>, vector<16x1xf32>
    %106 = tpu.reciprocal %105 {approx = true} : vector<16x1xf32> -> vector<16x1xf32>
    %107 = vector.broadcast %106 : vector<16x1xf32> to vector<16x16xf32>
    %108 = arith.mulf %99, %107 : vector<16x16xf32>
    %109 = arith.truncf %108 : vector<16x16xf32> to vector<16x16xbf16>
    %cst_54 = arith.constant dense<0.000000e+00> : vector<16x128xf32>
    %110 = tpu.matmul %109, %78, %cst_54 {dimension_numbers = #tpu.dot_dimension_numbers<[1], [0], [0], [1], [0, 0, 1, 1], [], []>} : vector<16x16xbf16>, vector<16x128xbf16>, vector<16x128xf32> -> vector<16x128xf32>
    %111 = arith.truncf %0 : vector<16x128xf32> to vector<16x128xbf16>
    %cst_55 = arith.constant dense<0.000000e+00> : vector<16x128xf32>
    %112 = tpu.matmul %111, %75, %cst_55 {dimension_numbers = #tpu.dot_dimension_numbers<[1], [0], [0], [1], [0, 0, 1, 1], [], []>} : vector<16x128xbf16>, vector<128x128xbf16>, vector<16x128xf32> -> vector<16x128xf32>
    %113 = arith.addf %110, %112 : vector<16x128xf32>
    %114 = vector.broadcast %73 : vector<1x128xf32> to vector<16x128xf32>
    %115 = arith.addf %113, %114 : vector<16x128xf32>
    %cst_56 = arith.constant 0.000000e+00 : f32
    %116 = vector.broadcast %cst_56 : f32 to vector<16x128xf32>
    %117 = arith.cmpf ogt, %115, %116 : vector<16x128xf32>
    %cst_57 = arith.constant 0.000000e+00 : f32
    %118 = vector.broadcast %cst_57 : f32 to vector<16x128xf32>
    %119 = arith.minimumf %115, %118 : vector<16x128xf32>
    %120 = math.exp %119 : vector<16x128xf32>
    %cst_58 = arith.constant 1.000000e+00 : f32
    %121 = vector.broadcast %cst_58 : f32 to vector<16x128xf32>
    %122 = arith.subf %120, %121 : vector<16x128xf32>
    %123 = arith.select %117, %115, %122 : vector<16x128xi1>, vector<16x128xf32>
    %c2 = arith.constant 2 : index
    %c0_59 = arith.constant 0 : index
    %c0_60 = arith.constant 0 : index
    %124 = vector.load %arg4[%c2, %c0_59, %c0_60] : memref<4x128x128xbf16, #tpu.memory_space<vmem>>, vector<1x128x128xbf16>
    %125 = vector.shape_cast %124 : vector<1x128x128xbf16> to vector<128x128xbf16>
    %c2_61 = arith.constant 2 : index
    %c0_62 = arith.constant 0 : index
    %c0_63 = arith.constant 0 : index
    %126 = vector.load %arg5[%c2_61, %c0_62, %c0_63] : memref<4x8x128xf32, #tpu.memory_space<vmem>>, vector<1x8x128xf32>
    %127 = vector.shape_cast %126 : vector<1x8x128xf32> to vector<8x128xf32>
    %128 = vector.extract_strided_slice %127 {offsets = [0, 0], sizes = [1, 128], strides = [1, 1]} : vector<8x128xf32> to vector<1x128xf32>
    %129 = vector.extract_strided_slice %127 {offsets = [1, 0], sizes = [1, 128], strides = [1, 1]} : vector<8x128xf32> to vector<1x128xf32>
    %130 = vector.extract_strided_slice %127 {offsets = [2, 0], sizes = [1, 128], strides = [1, 1]} : vector<8x128xf32> to vector<1x128xf32>
    %c2_64 = arith.constant 2 : index
    %c0_65 = arith.constant 0 : index
    %c0_66 = arith.constant 0 : index
    %131 = vector.load %arg6[%c2_64, %c0_65, %c0_66] : memref<4x128x128xbf16, #tpu.memory_space<vmem>>, vector<1x128x128xbf16>
    %132 = vector.shape_cast %131 : vector<1x128x128xbf16> to vector<128x128xbf16>
    %133 = arith.truncf %123 : vector<16x128xf32> to vector<16x128xbf16>
    %cst_67 = arith.constant dense<0.000000e+00> : vector<16x128xf32>
    %134 = tpu.matmul %133, %125, %cst_67 {dimension_numbers = #tpu.dot_dimension_numbers<[1], [0], [0], [1], [0, 0, 1, 1], [], []>} : vector<16x128xbf16>, vector<128x128xbf16>, vector<16x128xf32> -> vector<16x128xf32>
    %135 = arith.truncf %134 : vector<16x128xf32> to vector<16x128xbf16>
    %136 = arith.truncf %128 : vector<1x128xf32> to vector<1x128xbf16>
    %cst_68 = arith.constant dense<0.000000e+00> : vector<1x16xf32>
    %137 = tpu.matmul %136, %135, %cst_68 {dimension_numbers = #tpu.dot_dimension_numbers<[1], [1], [0], [0], [0, 0, 1, 0], [], []>} : vector<1x128xbf16>, vector<16x128xbf16>, vector<1x16xf32> -> vector<1x16xf32>
    %138 = vector.broadcast %129 : vector<1x128xf32> to vector<16x128xf32>
    %139 = arith.mulf %66, %138 : vector<16x128xf32>
    %cst_69 = arith.constant dense<0.000000e+00> : vector<16xf32>
    %140 = vector.multi_reduction <add>, %139, %cst_69 [1] : vector<16x128xf32> to vector<16xf32>
    %141 = vector.shape_cast %140 : vector<16xf32> to vector<16x1xf32>
    %142 = vector.broadcast %141 : vector<16x1xf32> to vector<16x16xf32>
    %143 = vector.broadcast %137 : vector<1x16xf32> to vector<16x16xf32>
    %144 = arith.addf %142, %143 : vector<16x16xf32>
    %cst_70 = arith.constant 0.000000e+00 : f32
    %145 = vector.broadcast %cst_70 : f32 to vector<16x16xf32>
    %146 = arith.cmpf ogt, %144, %145 : vector<16x16xf32>
    %cst_71 = arith.constant 2.000000e-01 : f32
    %147 = vector.broadcast %cst_71 : f32 to vector<16x16xf32>
    %148 = arith.mulf %147, %144 : vector<16x16xf32>
    %149 = arith.select %146, %144, %148 : vector<16x16xi1>, vector<16x16xf32>
    %150 = arith.addf %149, %3 : vector<16x16xf32>
    %cst_72 = arith.constant dense<0xFF800000> : vector<16xf32>
    %151 = vector.multi_reduction <maximumf>, %150, %cst_72 [1] : vector<16x16xf32> to vector<16xf32>
    %152 = vector.shape_cast %151 : vector<16xf32> to vector<16x1xf32>
    %153 = vector.broadcast %152 : vector<16x1xf32> to vector<16x16xf32>
    %154 = arith.subf %150, %153 : vector<16x16xf32>
    %155 = math.exp %154 : vector<16x16xf32>
    %156 = arith.mulf %155, %5 : vector<16x16xf32>
    %cst_73 = arith.constant dense<0.000000e+00> : vector<16xf32>
    %157 = vector.multi_reduction <add>, %156, %cst_73 [1] : vector<16x16xf32> to vector<16xf32>
    %158 = vector.shape_cast %157 : vector<16xf32> to vector<16x1xf32>
    %cst_74 = arith.constant 0.000000e+00 : f32
    %159 = vector.broadcast %cst_74 : f32 to vector<16x1xf32>
    %160 = arith.cmpf ogt, %158, %159 : vector<16x1xf32>
    %cst_75 = arith.constant 1.000000e+00 : f32
    %161 = vector.broadcast %cst_75 : f32 to vector<16x1xf32>
    %162 = arith.select %160, %158, %161 : vector<16x1xi1>, vector<16x1xf32>
    %163 = tpu.reciprocal %162 {approx = true} : vector<16x1xf32> -> vector<16x1xf32>
    %164 = vector.broadcast %163 : vector<16x1xf32> to vector<16x16xf32>
    %165 = arith.mulf %156, %164 : vector<16x16xf32>
    %166 = arith.truncf %165 : vector<16x16xf32> to vector<16x16xbf16>
    %cst_76 = arith.constant dense<0.000000e+00> : vector<16x128xf32>
    %167 = tpu.matmul %166, %135, %cst_76 {dimension_numbers = #tpu.dot_dimension_numbers<[1], [0], [0], [1], [0, 0, 1, 1], [], []>} : vector<16x16xbf16>, vector<16x128xbf16>, vector<16x128xf32> -> vector<16x128xf32>
    %168 = arith.truncf %66 : vector<16x128xf32> to vector<16x128xbf16>
    %cst_77 = arith.constant dense<0.000000e+00> : vector<16x128xf32>
    %169 = tpu.matmul %168, %132, %cst_77 {dimension_numbers = #tpu.dot_dimension_numbers<[1], [0], [0], [1], [0, 0, 1, 1], [], []>} : vector<16x128xbf16>, vector<128x128xbf16>, vector<16x128xf32> -> vector<16x128xf32>
    %170 = arith.addf %167, %169 : vector<16x128xf32>
    %171 = vector.broadcast %130 : vector<1x128xf32> to vector<16x128xf32>
    %172 = arith.addf %170, %171 : vector<16x128xf32>
    %cst_78 = arith.constant 0.000000e+00 : f32
    %173 = vector.broadcast %cst_78 : f32 to vector<16x128xf32>
    %174 = arith.cmpf ogt, %172, %173 : vector<16x128xf32>
    %cst_79 = arith.constant 0.000000e+00 : f32
    %175 = vector.broadcast %cst_79 : f32 to vector<16x128xf32>
    %176 = arith.minimumf %172, %175 : vector<16x128xf32>
    %177 = math.exp %176 : vector<16x128xf32>
    %cst_80 = arith.constant 1.000000e+00 : f32
    %178 = vector.broadcast %cst_80 : f32 to vector<16x128xf32>
    %179 = arith.subf %177, %178 : vector<16x128xf32>
    %180 = arith.select %174, %172, %179 : vector<16x128xi1>, vector<16x128xf32>
    %c3 = arith.constant 3 : index
    %c0_81 = arith.constant 0 : index
    %c0_82 = arith.constant 0 : index
    %181 = vector.load %arg4[%c3, %c0_81, %c0_82] : memref<4x128x128xbf16, #tpu.memory_space<vmem>>, vector<1x128x128xbf16>
    %182 = vector.shape_cast %181 : vector<1x128x128xbf16> to vector<128x128xbf16>
    %c3_83 = arith.constant 3 : index
    %c0_84 = arith.constant 0 : index
    %c0_85 = arith.constant 0 : index
    %183 = vector.load %arg5[%c3_83, %c0_84, %c0_85] : memref<4x8x128xf32, #tpu.memory_space<vmem>>, vector<1x8x128xf32>
    %184 = vector.shape_cast %183 : vector<1x8x128xf32> to vector<8x128xf32>
    %185 = vector.extract_strided_slice %184 {offsets = [0, 0], sizes = [1, 128], strides = [1, 1]} : vector<8x128xf32> to vector<1x128xf32>
    %186 = vector.extract_strided_slice %184 {offsets = [1, 0], sizes = [1, 128], strides = [1, 1]} : vector<8x128xf32> to vector<1x128xf32>
    %187 = vector.extract_strided_slice %184 {offsets = [2, 0], sizes = [1, 128], strides = [1, 1]} : vector<8x128xf32> to vector<1x128xf32>
    %c3_86 = arith.constant 3 : index
    %c0_87 = arith.constant 0 : index
    %c0_88 = arith.constant 0 : index
    %188 = vector.load %arg6[%c3_86, %c0_87, %c0_88] : memref<4x128x128xbf16, #tpu.memory_space<vmem>>, vector<1x128x128xbf16>
    %189 = vector.shape_cast %188 : vector<1x128x128xbf16> to vector<128x128xbf16>
    %190 = arith.truncf %66 : vector<16x128xf32> to vector<16x128xbf16>
    %cst_89 = arith.constant dense<0.000000e+00> : vector<16x128xf32>
    %191 = tpu.matmul %190, %182, %cst_89 {dimension_numbers = #tpu.dot_dimension_numbers<[1], [0], [0], [1], [0, 0, 1, 1], [], []>} : vector<16x128xbf16>, vector<128x128xbf16>, vector<16x128xf32> -> vector<16x128xf32>
    %192 = arith.truncf %191 : vector<16x128xf32> to vector<16x128xbf16>
    %193 = arith.truncf %185 : vector<1x128xf32> to vector<1x128xbf16>
    %cst_90 = arith.constant dense<0.000000e+00> : vector<1x16xf32>
    %194 = tpu.matmul %193, %192, %cst_90 {dimension_numbers = #tpu.dot_dimension_numbers<[1], [1], [0], [0], [0, 0, 1, 0], [], []>} : vector<1x128xbf16>, vector<16x128xbf16>, vector<1x16xf32> -> vector<1x16xf32>
    %195 = vector.broadcast %186 : vector<1x128xf32> to vector<16x128xf32>
    %196 = arith.mulf %123, %195 : vector<16x128xf32>
    %cst_91 = arith.constant dense<0.000000e+00> : vector<16xf32>
    %197 = vector.multi_reduction <add>, %196, %cst_91 [1] : vector<16x128xf32> to vector<16xf32>
    %198 = vector.shape_cast %197 : vector<16xf32> to vector<16x1xf32>
    %199 = vector.broadcast %198 : vector<16x1xf32> to vector<16x16xf32>
    %200 = vector.broadcast %194 : vector<1x16xf32> to vector<16x16xf32>
    %201 = arith.addf %199, %200 : vector<16x16xf32>
    %cst_92 = arith.constant 0.000000e+00 : f32
    %202 = vector.broadcast %cst_92 : f32 to vector<16x16xf32>
    %203 = arith.cmpf ogt, %201, %202 : vector<16x16xf32>
    %cst_93 = arith.constant 2.000000e-01 : f32
    %204 = vector.broadcast %cst_93 : f32 to vector<16x16xf32>
    %205 = arith.mulf %204, %201 : vector<16x16xf32>
    %206 = arith.select %203, %201, %205 : vector<16x16xi1>, vector<16x16xf32>
    %207 = arith.addf %206, %7 : vector<16x16xf32>
    %cst_94 = arith.constant dense<0xFF800000> : vector<16xf32>
    %208 = vector.multi_reduction <maximumf>, %207, %cst_94 [1] : vector<16x16xf32> to vector<16xf32>
    %209 = vector.shape_cast %208 : vector<16xf32> to vector<16x1xf32>
    %210 = vector.broadcast %209 : vector<16x1xf32> to vector<16x16xf32>
    %211 = arith.subf %207, %210 : vector<16x16xf32>
    %212 = math.exp %211 : vector<16x16xf32>
    %213 = arith.mulf %212, %9 : vector<16x16xf32>
    %cst_95 = arith.constant dense<0.000000e+00> : vector<16xf32>
    %214 = vector.multi_reduction <add>, %213, %cst_95 [1] : vector<16x16xf32> to vector<16xf32>
    %215 = vector.shape_cast %214 : vector<16xf32> to vector<16x1xf32>
    %cst_96 = arith.constant 0.000000e+00 : f32
    %216 = vector.broadcast %cst_96 : f32 to vector<16x1xf32>
    %217 = arith.cmpf ogt, %215, %216 : vector<16x1xf32>
    %cst_97 = arith.constant 1.000000e+00 : f32
    %218 = vector.broadcast %cst_97 : f32 to vector<16x1xf32>
    %219 = arith.select %217, %215, %218 : vector<16x1xi1>, vector<16x1xf32>
    %220 = tpu.reciprocal %219 {approx = true} : vector<16x1xf32> -> vector<16x1xf32>
    %221 = vector.broadcast %220 : vector<16x1xf32> to vector<16x16xf32>
    %222 = arith.mulf %213, %221 : vector<16x16xf32>
    %223 = arith.truncf %222 : vector<16x16xf32> to vector<16x16xbf16>
    %cst_98 = arith.constant dense<0.000000e+00> : vector<16x128xf32>
    %224 = tpu.matmul %223, %192, %cst_98 {dimension_numbers = #tpu.dot_dimension_numbers<[1], [0], [0], [1], [0, 0, 1, 1], [], []>} : vector<16x16xbf16>, vector<16x128xbf16>, vector<16x128xf32> -> vector<16x128xf32>
    %225 = arith.truncf %123 : vector<16x128xf32> to vector<16x128xbf16>
    %cst_99 = arith.constant dense<0.000000e+00> : vector<16x128xf32>
    %226 = tpu.matmul %225, %189, %cst_99 {dimension_numbers = #tpu.dot_dimension_numbers<[1], [0], [0], [1], [0, 0, 1, 1], [], []>} : vector<16x128xbf16>, vector<128x128xbf16>, vector<16x128xf32> -> vector<16x128xf32>
    %227 = arith.addf %224, %226 : vector<16x128xf32>
    %228 = vector.broadcast %187 : vector<1x128xf32> to vector<16x128xf32>
    %229 = arith.addf %227, %228 : vector<16x128xf32>
    %cst_100 = arith.constant 0.000000e+00 : f32
    %230 = vector.broadcast %cst_100 : f32 to vector<16x128xf32>
    %231 = arith.cmpf ogt, %229, %230 : vector<16x128xf32>
    %cst_101 = arith.constant 0.000000e+00 : f32
    %232 = vector.broadcast %cst_101 : f32 to vector<16x128xf32>
    %233 = arith.minimumf %229, %232 : vector<16x128xf32>
    %234 = math.exp %233 : vector<16x128xf32>
    %cst_102 = arith.constant 1.000000e+00 : f32
    %235 = vector.broadcast %cst_102 : f32 to vector<16x128xf32>
    %236 = arith.subf %234, %235 : vector<16x128xf32>
    %237 = arith.select %231, %229, %236 : vector<16x128xi1>, vector<16x128xf32>
    %c0_103 = arith.constant 0 : index
    %c0_104 = arith.constant 0 : index
    %238 = vector.load %arg7[%c0_103, %c0_104] : memref<16x128xf32, #tpu.memory_space<vmem>>, vector<16x128xf32>
    tpu.vector_store %arg7[%c0_103, %c0_104], %237 {strides = array<i32>} : memref<16x128xf32, #tpu.memory_space<vmem>>, vector<16x128xf32>,
    %c0_105 = arith.constant 0 : index
    %c0_106 = arith.constant 0 : index
    %239 = vector.load %arg8[%c0_105, %c0_106] : memref<16x128xf32, #tpu.memory_space<vmem>>, vector<16x128xf32>
    tpu.vector_store %arg8[%c0_105, %c0_106], %180 {strides = array<i32>} : memref<16x128xf32, #tpu.memory_space<vmem>>, vector<16x128xf32>,
    return
  }
}

</mosaic_0001>

<bundles_post_ra>
// kernel: tpu_custom_call.1
= control target key start
LH: loop header
LB: loop body
LE: loop exit
PB: predicated region body
PF: predicated region fallthrough
CT: control target
= control target key end

     0   :  { %14 = vsyncpa [#allocation3], 0  ;;  %s2031_s0 = inlined_call_operand.hbm [shape: f32[16,128], index: 0, kind: input, shape index: {}]   ;;  %s2032_s1 = inlined_call_operand.hbm [shape: f32[16,128], index: 1, kind: input, shape index: {}]   ;;  %s2033_s2 = inlined_call_operand.hbm [shape: f32[2,16,16], index: 2, kind: input, shape index: {}]   ;;  %s2034_s3 = inlined_call_operand.hbm [shape: f32[2,16,16], index: 3, kind: input, shape index: {}]   ;;  %s2035_s4 = inlined_call_operand.hbm [shape: bf16[4,128,128], index: 4, kind: input, shape index: {}]   ;;  %s2036_s5 = inlined_call_operand.hbm [shape: f32[4,8,128], index: 5, kind: input, shape index: {}]   ;;  %s2037_s6 = inlined_call_operand.hbm [shape: bf16[4,128,128], index: 6, kind: input, shape index: {}]   ;;  %s2038_s7 = inlined_call_operand.hbm [shape: f32[16,128], index: 7, kind: output, shape index: {0}]   ;;  %s2039_s8 = inlined_call_operand.hbm [shape: f32[16,128], index: 8, kind: output, shape index: {1}]  }
   0x1   :  { %15 = vsyncpa [#allocation6], 0 }
   0x2   :  { %16 = vsyncpa [#allocation9], 0 }
   0x3   :  { %17 = vsyncpa [#allocation12], 0 }
   0x4   :  { %18 = vsyncpa [#allocation4], 0 }
   0x5   :  { %19 = vsyncpa [#allocation16], 0  ;;  %s37_s29 = sshll.u32 %s2032_s1, 4  ;;  %s1837_s30 = smov [#allocation5]   ;;  %s38_s29 = int_to_ptr.hbm [resolvable:$true] %s37_s29 }
   0x6   :  { %s39_s9 = sshll.u32 %s1837_s30, 4  ;;  %s63_s12 = sshll.u32 %s2034_s3, 4  ;;  %s40_s9 = int_to_ptr.vmem [resolvable:$true] %s39_s9  ;;  %s64_s12 = int_to_ptr.hbm [resolvable:$true] %s63_s12 }
   0x7   :  { %s1838_s13 = smov 128   ;;  %s1839_s14 = smov 8  }
   0x8   :  { %45 = dma.hbm_to_vmem [thread:$0]  %s38_s29, 256, %s40_s9, [#allocation6], %s1838_s13, %s1838_s13, %s1839_s14  }
   0x9   :  { %s1840_s15 = smov [#allocation8]   ;;  %s89_s1 = sshll.u32 %s2036_s5, 4  ;;  %s90_s1 = int_to_ptr.hbm [resolvable:$true] %s89_s1 }
   0xa   :  { %s65_s16 = sshll.u32 %s1840_s15, 4  ;;  %s24_s20 = sshll.u32 %s2031_s0, 4  ;;  %s66_s16 = int_to_ptr.vmem [resolvable:$true] %s65_s16  ;;  %s25_s20 = int_to_ptr.hbm [resolvable:$true] %s24_s20 }
   0xb   :  { %71 = dma.hbm_to_vmem [thread:$0]  %s64_s12, 512, %s66_s16, [#allocation9], %s1838_s13, %s1838_s13, %s1839_s14  }
   0xc   :  { %s1841_s21 = smov [#allocation11]   ;;  %s1842_s23 = smov [#allocation2]  }
   0xd   :  { %s91_s22 = sshll.u32 %s1841_s21, 4  ;;  %s26_s5 = sshll.u32 %s1842_s23, 4  ;;  %s92_s22 = int_to_ptr.vmem [resolvable:$true] %s91_s22  ;;  %s27_s5 = int_to_ptr.vmem [resolvable:$true] %s26_s5 }
   0xe   :  { %97 = dma.hbm_to_vmem [thread:$0]  %s90_s1, 512, %s92_s22, [#allocation12], %s1838_s13, %s1838_s13, %s1839_s14  }
   0xf   :  { %s50_s26 = sshll.u32 %s2033_s2, 4  ;;  %s76_s28 = sshll.u32 %s2035_s4, 4  ;;  %s51_s26 = int_to_ptr.hbm [resolvable:$true] %s50_s26  ;;  %s77_s28 = int_to_ptr.hbm [resolvable:$true] %s76_s28 }
  0x10   :  { %32 = dma.hbm_to_vmem [thread:$0]  %s25_s20, 256, %s27_s5, [#allocation3], %s1838_s13, %s1838_s13, %s1839_s14  }
  0x11   :  { %s1843_s29 = smov [#allocation7]   ;;  %s1844_s9 = smov [#allocation10]  }
  0x12   :  { %s52_s30 = sshll.u32 %s1843_s29, 4  ;;  %s78_s2 = sshll.u32 %s1844_s9, 4  ;;  %s53_s30 = int_to_ptr.vmem [resolvable:$true] %s52_s30  ;;  %s79_s2 = int_to_ptr.vmem [resolvable:$true] %s78_s2 }
  0x13   :  { %58 = dma.hbm_to_vmem [thread:$0]  %s51_s26, 512, %s53_s30, [#allocation6], %s1838_s13, %s1838_s13, %s1839_s14  }
  0x14   :  { %s1845_s10 = smov 64   ;;  %s1846_s11 = smov 4  }
  0x15   :  { %84 = dma.hbm_to_vmem [thread:$0]  %s77_s28, 4096, %s79_s2, [#allocation9], %s1845_s10, %s1845_s10, %s1846_s11  }
  0x16   :  { %s102_s16 = sshll.u32 %s2037_s6, 4  ;;  %s1847_s4 = smov [#allocation13]   ;;  %s103_s16 = int_to_ptr.hbm [resolvable:$true] %s102_s16 }
  0x17   :  { %s104_s17 = sshll.u32 %s1847_s4, 4  ;;  %s105_s17 = int_to_ptr.vmem [resolvable:$true] %s104_s17 }
  0x18   :  { %110 = dma.hbm_to_vmem [thread:$0]  %s103_s16, 4096, %s105_s17, [#allocation12], %s1845_s10, %s1845_s10, %s1846_s11  }
  0x19   :  { %1825 = dma.done.wait [#allocation3], 256  }
  0x1a   :  { %1826 = vsyncadd [#allocation3], 4294967040 }
  0x1b   :  { %1827 = dma.done.wait [#allocation6], 768  }
  0x1c   :  { %1828 = vsyncadd [#allocation6], 4294966528 }
  0x1d   :  { %1829 = dma.done.wait [#allocation9], 4608  }
  0x1e   :  { %1830 = vsyncadd [#allocation9], 4294962688 }
  0x1f   :  { %1831 = dma.done.wait [#allocation12], 4608  }
  0x20   :  { %1832 = vsyncadd [#allocation12], 4294962688  ;;  %v1491_v0 = vld [vmem:[#allocation10 + $0x38] sm:$0xff]  ;;  %v1490_v2 = vld [vmem:[#allocation10 + $0x30] sm:$0xff]  ;;  %vm283_vm2 = vcmask 130048   ;;  %s1848_s6 = smov [#allocation15]  }
  0x21   :  { %v1507_v1 = vld [vmem:[#allocation10 + $0x78] sm:$0xff]  ;;  %236 = vmatpush.bf16.msra.mxu0 %v1491_v0  ;;  %v1506_v3 = vld [vmem:[#allocation10 + $0x70] sm:$0xff]  ;;  %v1489_v4 = vld [vmem:[#allocation10 + $0x28] sm:$0xff]  ;;  %s1193_s18 = sshll.u32 %s1848_s6, 4  ;;  %s1195_s19 = sshll.u32 %s2039_s8, 4  ;;  %s1194_s18 = int_to_ptr.vmem [resolvable:$true] %s1193_s18  ;;  %s1196_s19 = int_to_ptr.hbm [resolvable:$true] %s1195_s19 }
  0x22   :  { %492 = vmatpush.bf16.msra.mxu3 %v1507_v1  ;;  %v1505_v5 = vld [vmem:[#allocation10 + $0x68] sm:$0xff]  ;;  %v1499_v6 = vld [vmem:[#allocation13 + $0x38] sm:$0xff]  ;;  %v1498_v7 = vld [vmem:[#allocation13 + $0x30] sm:$0xff]  ;;  %s1849_s8 = smov [#allocation14]   ;;  %s1182_s23 = sshll.u32 %s2038_s7, 4  ;;  %s1183_s23 = int_to_ptr.hbm [resolvable:$true] %s1182_s23 }
  0x23   :  { %362 = vmatpush.bf16.msra.mxu2 %v1499_v6  ;;  %v1488_v8 = vld [vmem:[#allocation10 + $0x20] sm:$0xff]  ;;  %v1497_v10 = vld [vmem:[#allocation13 + $0x28] sm:$0xff]  ;;  %v1487_v11 = vld [vmem:[#allocation10 + $0x18] sm:$0xff]  ;;  %s1180_s20 = sshll.u32 %s1849_s8, 4  ;;  %s1181_s20 = int_to_ptr.vmem [resolvable:$true] %s1180_s20 }
  0x24   :  { %v1504_v9 = vld [vmem:[#allocation10 + $0x60] sm:$0xff]  ;;  %v1503_v12 = vld [vmem:[#allocation10 + $0x58] sm:$0xff]  ;;  %v1486_v14 = vld [vmem:[#allocation10 + $0x10] sm:$0xff] }
  0x25   :  { %237 = vmatpush.bf16.msra.mxu0 %v1490_v2  ;;  %v1496_v13 = vld [vmem:[#allocation13 + $0x20] sm:$0xff]  ;;  %v1502_v15 = vld [vmem:[#allocation10 + $0x50] sm:$0xff]  ;;  %v1495_v16 = vld [vmem:[#allocation13 + $0x18] sm:$0xff] }
  0x26   :  { %493 = vmatpush.bf16.msra.mxu3 %v1506_v3  ;;  %v1485_v17 = vld [vmem:[#allocation10 + $0x8] sm:$0xff]  ;;  %v1484_v19 = vld [vmem:[#allocation10] sm:$0xff]  ;;  %v142_v23 = vld [vmem:[#allocation5] sm:$0xff] }
  0x27   :  { %363 = vmatpush.bf16.msra.mxu2 %v1498_v7  ;;  %v1501_v18 = vld [vmem:[#allocation10 + $0x48] sm:$0xff]  ;;  %v1500_v20 = vld [vmem:[#allocation10 + $0x40] sm:$0xff]  ;;  %v143_v24 = vld [vmem:[#allocation5 + $0x8] sm:$0xff] }
  0x28   :  { %v140_v21 = vld [vmem:[#allocation2] sm:$0xff]  ;;  %v141_v22 = vld [vmem:[#allocation2 + $0x8] sm:$0xff]  ;;  %v313_v26 = vpack.c.bf16 %v143_v24, %v142_v23  ;;  %v1494_v27 = vld [vmem:[#allocation13 + $0x10] sm:$0xff] }
  0x29   :  { %238 = vmatpush.bf16.msra.mxu0 %v1489_v4  ;;  %v1931_v25 = vpack.c.bf16 %v141_v22, %v140_v21  ;;  %v1493_v28 = vld [vmem:[#allocation13 + $0x8] sm:$0xff]  ;;  %v1492_v29 = vld [vmem:[#allocation13] sm:$0xff] }
  0x2a   :  { %494 = vmatpush.bf16.msra.mxu3 %v1505_v5  ;;  %v1934_v30 = vld [vmem:[#allocation11] sm:$0xff]  ;;  %v1937_v35 = vld [vmem:[#allocation11 + $0x8] sm:$0xff] }
  0x2b   :  { %364 = vmatpush.bf16.msra.mxu2 %v1497_v10  ;;  %v265_v31 = vperm.slane %v1934_v30, 1  ;;  %v521_v36 = vperm.slane %v1937_v35, 1  ;;  %v251_v43 = vpack.c.bf16 %v1934_v30, %v1934_v30  ;;  %v507_v45 = vpack.c.bf16 %v1937_v35, %v1937_v35  ;;  %v1944_v52 = vld [vmem:[#allocation7 + $0x8] sm:$0xff]  ;;  %v1946_v53 = vld [vmem:[#allocation7] sm:$0xff] }
  0x2c   :  { %v1952_v6 = vld [vmem:[#allocation8] sm:$0xff] }
  0x2d   :  { %239 = vmatpush.bf16.msra.mxu0 %v1488_v8  ;;  %v266_v32 = vmul.f32 %v265_v31, %v142_v23  ;;  %v267_v33 = vmul.f32 %v265_v31, %v143_v24  ;;  %v522_v37 = vmul.f32 %v521_v36, %v140_v21  ;;  %v523_v41 = vmul.f32 %v521_v36, %v141_v22 }
  0x2e   :  { %495 = vmatpush.bf16.msra.mxu3 %v1504_v9 }
  0x2f   :  { %365 = vmatpush.bf16.msra.mxu2 %v1496_v13  ;;  %268 = vadd.xlane.f32.xlu1 %v266_v32 }
  0x30   :  { %524 = vadd.xlane.f32.xlu0 %v522_v37 }
  0x31   :  { %240 = vmatpush.bf16.msra.mxu0 %v1487_v11 }
  0x32   :  { %496 = vmatpush.bf16.msra.mxu3 %v1503_v12  ;;  %v1956_v12 = vld [vmem:[#allocation8 + $0x8] sm:$0xff] }
  0x33   :  { %366 = vmatpush.bf16.msra.mxu2 %v1495_v16 }
  0x35   :  { %241 = vmatpush.bf16.msra.mxu0 %v1486_v14 }
  0x36   :  { %497 = vmatpush.bf16.msra.mxu3 %v1502_v15 }
  0x37   :  { %367 = vmatpush.bf16.msra.mxu2 %v1494_v27  ;;  %270 = vadd.xlane.f32.xlu1 %v267_v33 }
  0x38   :  { %526 = vadd.xlane.f32.xlu0 %v523_v41  ;;  %v1971_v41 = vld [vmem:[#allocation7 + $0x18] sm:$0xff] }
  0x39   :  { %242 = vmatpush.bf16.msra.mxu0 %v1485_v17 }
  0x3a   :  { %498 = vmatpush.bf16.msra.mxu3 %v1501_v18 }
  0x3b   :  { %368 = vmatpush.bf16.msra.mxu2 %v1493_v28 }
  0x3d   :  { %243 = vmatpush.bf16.msra.mxu0 %v1484_v19  ;;  %v1515_v19 = vld [vmem:[#allocation13 + $0x78] sm:$0xff] }
  0x3e   :  { %499 = vmatpush.bf16.msra.mxu3 %v1500_v20  ;;  %v1960_v20 = vld [vmem:[#allocation7 + $0x10] sm:$0xff] }
  0x3f   :  { %369 = vmatpush.bf16.msra.mxu2 %v1492_v29 }
  0x40   :  { %244 = vmatmul.bf16.vlgmr.msra.gmra.mxu0 %v1931_v25 }
  0x41   :  { %500 = vmatmul.bf16.vlgmr.msra.gmra.mxu3 %v313_v26 }
  0x42   :  { %370 = vmatmul.bf16.vlgmr.msra.gmra.mxu2 %v313_v26 }
  0xa2   :  { %v269_v46 = vpop.xlane.xlu1 %268 }
  0xa3   :  { %v525_v56 = vpop.xlane.xlu0 %524 }
  0xaa   :  { %v271_v48 = vpop.xlane.xlu1 %270 }
  0xab   :  { %v527_v1 = vpop.xlane.xlu0 %526 }
  0xbd   :  { %v245_v34 = vpop.f32.mrf.mxu0 }
  0xc4   :  { %v501_v38 = vpop.f32.mrf.mxu3 }
  0xc5   :  { %v247_v39 = vpop.f32.mrf.mxu0 }
  0xc6   :  { %v250_v40 = vpack.c.bf16 %v247_v39, %v245_v34  ;;  %v1967_v34 = vld [vmem:[#allocation8 + $0x10] sm:$0xff] }
  0xc8   :  { %259 = vmatpush.bf16.xpose.msra.mxu1 %v250_v40  ;;  %386 = vmatpush.bf16.msrb.mxu2 %v250_v40 }
  0xcc   :  { %v503_v42 = vpop.f32.mrf.mxu3 }
  0xcd   :  { %v506_v44 = vpack.c.bf16 %v503_v42, %v501_v38  ;;  %v1973_v42 = vld [vmem:[#allocation8 + $0x18] sm:$0xff] }
  0xcf   :  { %640 = vmatpush.bf16.msrb.mxu0 %v506_v44  ;;  %260 = vmatmul.bf16.vlgmr.msra.gmra.mxu1 %v251_v43 }
  0xd0   :  { %515 = vmatpush.bf16.xpose.msrb.mxu1 %v506_v44 }
  0xd8   :  { %616 = vmatpush.bf16.msra.mxu1 %v1515_v19  ;;  %v1520_v19 = vld [vmem:[#allocation10 + $0xa0] sm:$0xff] }
  0xdf   :  { %516 = vmatmul.bf16.vlgmr.msrb.gmra.mxu1 %v507_v45 }
 0x14c   :  { %v261_v47 = vpop.f32.mrf.mxu1 }
 0x14d   :  { %v272_v49 = vperm.slane %v261_v47, 0 }
 0x14f   :  { %v273_v50 = vadd.f32 %v272_v49, %v269_v46  ;;  %v274_v51 = vadd.f32 %v272_v49, %v271_v48  ;;  %v1514_v48 = vld [vmem:[#allocation13 + $0x70] sm:$0xff]  ;;  %v1513_v49 = vld [vmem:[#allocation13 + $0x68] sm:$0xff] }
 0x150   :  { %617 = vmatpush.bf16.msra.mxu1 %v1514_v48 }
 0x151   :  { %v277_v54 = vmul.f32 0.2, %v273_v50  ;;  %vm276_vm0 = vcmp.gt.f32.partialorder %v274_v51, 0.0  ;;  %v278_v55 = vmul.f32 0.2, %v274_v51  ;;  %vm275_vm1 = vcmp.gt.f32.partialorder %v273_v50, 0.0 }
 0x153   :  { %v280_v57 = vsel %vm276_vm0, %v274_v51, %v278_v55  ;;  %v279_v58 = vsel %vm275_vm1, %v273_v50, %v277_v54  ;;  %v1512_v50 = vld [vmem:[#allocation13 + $0x60] sm:$0xff]  ;;  %v1511_v51 = vld [vmem:[#allocation13 + $0x58] sm:$0xff]  ;;  %v1510_v54 = vld [vmem:[#allocation13 + $0x50] sm:$0xff] }
 0x154   :  { %v263_v59 = vpop.f32.mrf.mxu1  ;;  %v282_v60 = vadd.f32 %v280_v57, %v1944_v52  ;;  %v281_v61 = vadd.f32 %v279_v58, %v1946_v53  ;;  %618 = vmatpush.bf16.msra.mxu1 %v1513_v49  ;;  %v1509_v55 = vld [vmem:[#allocation13 + $0x48] sm:$0xff] }
 0x156   :  { %v287_v62 = vsel %vm283_vm2, %v282_v60, -inf  ;;  %v284_v63 = vsel %vm283_vm2, %v281_v61, -inf }
 0x157   :  { %288 = vmax.xlane.f32.xlu1 %v287_v62  ;;  %285 = vmax.xlane.f32.xlu0 %v284_v63 }
 0x158   :  { %619 = vmatpush.bf16.msra.mxu1 %v1512_v50 }
 0x15c   :  { %v517_v0 = vpop.f32.mrf.mxu1  ;;  %620 = vmatpush.bf16.msra.mxu1 %v1511_v51  ;;  %v393_v51 = vperm.slane %v1934_v30, 2 }
 0x15d   :  { %v528_v2 = vperm.slane %v517_v0, 0 }
 0x15f   :  { %v529_v3 = vadd.f32 %v528_v2, %v525_v56  ;;  %v530_v4 = vadd.f32 %v528_v2, %v527_v1  ;;  %v1508_v56 = vld [vmem:[#allocation13 + $0x40] sm:$0xff] }
 0x160   :  { %621 = vmatpush.bf16.msra.mxu1 %v1510_v54 }
 0x161   :  { %v533_v5 = vmul.f32 0.2, %v529_v3  ;;  %vm531_vm3 = vcmp.gt.f32.partialorder %v529_v3, 0.0  ;;  %v534_v7 = vmul.f32 0.2, %v530_v4  ;;  %vm532_vm4 = vcmp.gt.f32.partialorder %v530_v4, 0.0 }
 0x163   :  { %v535_v8 = vsel %vm531_vm3, %v529_v3, %v533_v5  ;;  %v536_v13 = vsel %vm532_vm4, %v530_v4, %v534_v7 }
 0x164   :  { %v519_v9 = vpop.f32.mrf.mxu1  ;;  %v537_v10 = vadd.f32 %v535_v8, %v1952_v6  ;;  %v538_v14 = vadd.f32 %v536_v13, %v1956_v12  ;;  %622 = vmatpush.bf16.msra.mxu1 %v1509_v55  ;;  %v1522_v13 = vld [vmem:[#allocation10 + $0xb0] sm:$0xff] }
 0x166   :  { %v539_v11 = vsel %vm283_vm2, %v537_v10, -inf  ;;  %v542_v15 = vsel %vm283_vm2, %v538_v14, -inf }
 0x167   :  { %540 = vmax.xlane.f32.xlu2 %v539_v11  ;;  %v1523_v11 = vld [vmem:[#allocation10 + $0xb8] sm:$0xff] }
 0x168   :  { %623 = vmatpush.bf16.msra.mxu1 %v1508_v56  ;;  %747 = vmatpush.bf16.msra.mxu2 %v1523_v11 }
 0x16b   :  { %624 = vmatmul.bf16.vlgmr.msra.gmra.mxu1 %v1931_v25 }
 0x16c   :  { %748 = vmatpush.bf16.msra.mxu2 %v1522_v13 }
 0x16f   :  { %543 = vmax.xlane.f32.xlu2 %v542_v15  ;;  %v1539_v15 = vld [vmem:[#allocation10 + $0xf8] sm:$0xff] }
 0x170   :  { %1002 = vmatpush.bf16.msrb.mxu1 %v1539_v15 }
 0x1ca   :  { %v286_v16 = vpop.xlane.xlu0 %285  ;;  %v289_v23 = vpop.xlane.xlu1 %288 }
 0x1cb   :  { %v290_v17 = vsub.f32 %v281_v61, %v286_v16  ;;  %v291_v27 = vsub.f32 %v282_v60, %v289_v23  ;;  %v1521_v16 = vld [vmem:[#allocation10 + $0xa8] sm:$0xff]  ;;  %v1519_v23 = vld [vmem:[#allocation10 + $0x98] sm:$0xff] }
 0x1cc   :  { %749 = vmatpush.bf16.msra.mxu2 %v1521_v16 }
 0x1cd   :  { %v292_v18 = vmul.f32 1.442695, %v290_v17  ;;  %v294_v31 = vmul.f32 1.442695, %v291_v27  ;;  %v1530_v17 = vld [vmem:[#allocation13 + $0xb0] sm:$0xff] }
 0x1ce   :  { %v1518_v27 = vld [vmem:[#allocation10 + $0x90] sm:$0xff] }
 0x1cf   :  { %1561 = vpow2.f32 %v292_v18  ;;  %v1538_v18 = vld [vmem:[#allocation10 + $0xf0] sm:$0xff] }
 0x1d0   :  { %1003 = vmatpush.bf16.msrb.mxu1 %v1538_v18  ;;  %750 = vmatpush.bf16.msra.mxu2 %v1520_v19 }
 0x1d4   :  { %751 = vmatpush.bf16.msra.mxu2 %v1519_v23 }
 0x1d5   :  { %v1562_v21 = vpop.eup %1561 }
 0x1d6   :  { %v1963_v22 = vmul.f32 %v1562_v21, %v1960_v20  ;;  %v1529_v21 = vld [vmem:[#allocation13 + $0xa8] sm:$0xff] }
 0x1d8   :  { %v298_v24 = vsel %vm283_vm2, %v1963_v22, 0.0  ;;  %752 = vmatpush.bf16.msra.mxu2 %v1518_v27 }
 0x1d9   :  { %299 = vadd.xlane.f32.xlu1 %v298_v24  ;;  %v1528_v24 = vld [vmem:[#allocation13 + $0xa0] sm:$0xff] }
 0x1da   :  { %v541_v26 = vpop.xlane.xlu2 %540 }
 0x1db   :  { %v545_v28 = vsub.f32 %v537_v10, %v541_v26  ;;  %v1536_v26 = vld [vmem:[#allocation10 + $0xe0] sm:$0xff] }
 0x1dd   :  { %v547_v29 = vmul.f32 1.442695, %v545_v28  ;;  %v371_v28 = vpop.f32.mrf.mxu2 }
 0x1df   :  { %1563 = vpow2.f32 %v547_v29  ;;  %v1527_v29 = vld [vmem:[#allocation13 + $0x98] sm:$0xff] }
 0x1e0   :  { %1565 = vpow2.f32 %v294_v31  ;;  %v1535_v31 = vld [vmem:[#allocation10 + $0xd8] sm:$0xff] }
 0x1e2   :  { %v544_v32 = vpop.xlane.xlu2 %543 }
 0x1e3   :  { %v546_v33 = vsub.f32 %v538_v14, %v544_v32  ;;  %v1531_v14 = vld [vmem:[#allocation13 + $0xb8] sm:$0xff]  ;;  %v1517_v32 = vld [vmem:[#allocation10 + $0x88] sm:$0xff] }
 0x1e4   :  { %872 = vmatpush.bf16.msra.mxu0 %v1531_v14  ;;  %753 = vmatpush.bf16.msra.mxu2 %v1517_v32 }
 0x1e5   :  { %v1564_v36 = vpop.eup %1563  ;;  %v549_v37 = vmul.f32 1.442695, %v546_v33  ;;  %v1526_v33 = vld [vmem:[#allocation13 + $0x90] sm:$0xff] }
 0x1e6   :  { %v551_v38 = vmul.f32 %v1564_v36, %v1967_v34  ;;  %v1566_v40 = vpop.eup %1565  ;;  %v1534_v36 = vld [vmem:[#allocation10 + $0xd0] sm:$0xff] }
 0x1e7   :  { %1567 = vpow2.f32 %v549_v37  ;;  %v297_v43 = vmul.f32 %v1566_v40, %v1971_v41  ;;  %v1516_v37 = vld [vmem:[#allocation10 + $0x80] sm:$0xff]  ;;  %v373_v40 = vpop.f32.mrf.mxu2 }
 0x1e8   :  { %v553_v39 = vsel %vm283_vm2, %v551_v38, 0.0  ;;  %873 = vmatpush.bf16.msra.mxu0 %v1530_v17  ;;  %754 = vmatpush.bf16.msra.mxu2 %v1516_v37 }
 0x1e9   :  { %554 = vadd.xlane.f32.xlu2 %v553_v39  ;;  %v301_v46 = vsel %vm283_vm2, %v297_v43, 0.0  ;;  %v1533_v39 = vld [vmem:[#allocation10 + $0xc8] sm:$0xff] }
 0x1ec   :  { %874 = vmatpush.bf16.msra.mxu0 %v1529_v21 }
 0x1ed   :  { %v1568_v44 = vpop.eup %1567 }
 0x1ee   :  { %v552_v45 = vmul.f32 %v1568_v44, %v1973_v42  ;;  %v1532_v44 = vld [vmem:[#allocation10 + $0xc0] sm:$0xff] }
 0x1f0   :  { %v556_v47 = vsel %vm283_vm2, %v552_v45, 0.0  ;;  %875 = vmatpush.bf16.msra.mxu0 %v1528_v24 }
 0x1f1   :  { %302 = vadd.xlane.f32.xlu2 %v301_v46  ;;  %557 = vadd.xlane.f32.xlu0 %v556_v47  ;;  %v647_v46 = vperm.slane %v1937_v35, 2 }
 0x1f4   :  { %876 = vmatpush.bf16.msra.mxu0 %v1527_v29 }
 0x1f8   :  { %877 = vmatpush.bf16.msra.mxu0 %v1526_v33 }
 0x24c   :  { %v300_v58 = vpop.xlane.xlu1 %299 }
 0x24d   :  { %vm304_vm6 = vcmp.gt.f32.partialorder %v300_v58, 0.0 }
 0x24e   :  { %v306_v60 = vsel %vm304_vm6, %v300_v58, 1.0 }
 0x25c   :  { %v555_v57 = vpop.xlane.xlu2 %554 }
 0x25d   :  { %vm559_vm5 = vcmp.gt.f32.partialorder %v555_v57, 0.0 }
 0x25e   :  { %v561_v59 = vsel %vm559_vm5, %v555_v57, 1.0 }
 0x25f   :  { %1569 = vrcp.f32 %v561_v59 }
 0x260   :  { %1571 = vrcp.f32 %v306_v60 }
 0x264   :  { %v558_v61 = vpop.xlane.xlu0 %557  ;;  %v303_v62 = vpop.xlane.xlu2 %302 }
 0x265   :  { %vm560_vm7 = vcmp.gt.f32.partialorder %v558_v61, 0.0  ;;  %vm305_vm8 = vcmp.gt.f32.partialorder %v303_v62, 0.0  ;;  %v1570_v1 = vpop.eup %1569 }
 0x266   :  { %v562_v63 = vsel %vm560_vm7, %v558_v61, 1.0  ;;  %v307_v0 = vsel %vm305_vm8, %v303_v62, 1.0  ;;  %v1572_v2 = vpop.eup %1571  ;;  %v565_v4 = vmul.f32 %v1570_v1, %v551_v38  ;;  %v1525_v38 = vld [vmem:[#allocation13 + $0x88] sm:$0xff] }
 0x267   :  { %1573 = vrcp.f32 %v562_v63  ;;  %v310_v7 = vmul.f32 %v1572_v2, %v1963_v22  ;;  %v1537_v22 = vld [vmem:[#allocation10 + $0xe8] sm:$0xff]  ;;  %878 = vmatpush.bf16.msra.mxu0 %v1525_v38  ;;  %v1985_v63 = vld [vmem:[#allocation11 + $0x18] sm:$0xff] }
 0x268   :  { %1575 = vrcp.f32 %v307_v0  ;;  %1004 = vmatpush.bf16.msrb.mxu1 %v1537_v22 }
 0x26c   :  { %1005 = vmatpush.bf16.msrb.mxu1 %v1536_v26 }
 0x26d   :  { %v1574_v3 = vpop.eup %1573 }
 0x26e   :  { %v1576_v25 = vpop.eup %1575  ;;  %v566_v5 = vmul.f32 %v1574_v3, %v552_v45  ;;  %v625_v45 = vpop.f32.mrf.mxu1 }
 0x26f   :  { %v311_v8 = vmul.f32 %v1576_v25, %v297_v43  ;;  %v1524_v43 = vld [vmem:[#allocation13 + $0x80] sm:$0xff]  ;;  %v1031_v25 = vperm.slane %v1985_v63, 1 }
 0x270   :  { %v567_v9 = vpack.c.bf16 %v566_v5, %v565_v4  ;;  %1006 = vmatpush.bf16.msrb.mxu1 %v1535_v31  ;;  %879 = vmatpush.bf16.msra.mxu0 %v1524_v43 }
 0x271   :  { %v312_v10 = vpack.c.bf16 %v311_v8, %v310_v7 }
 0x272   :  { %1347 = vmatmul.msk.bf16.vlgmr.msrb.gmra.mxu0 %vm283_vm2, %v567_v9  ;;  %v1988_v9 = vld [vmem:[#allocation11 + $0x10] sm:$0xff] }
 0x273   :  { %1280 = vmatmul.msk.bf16.vlgmr.msrb.gmra.mxu2 %vm283_vm2, %v312_v10  ;;  %v776_v14 = vperm.slane %v1988_v9, 1 }
 0x274   :  { %1007 = vmatpush.bf16.msrb.mxu1 %v1534_v36 }
 0x276   :  { %v627_v56 = vpop.f32.mrf.mxu1 }
 0x278   :  { %1008 = vmatpush.bf16.msrb.mxu1 %v1533_v39  ;;  %v762_v39 = vpack.c.bf16 %v1988_v9, %v1988_v9 }
 0x27c   :  { %1009 = vmatpush.bf16.msrb.mxu1 %v1532_v44 }
 0x2ef   :  { %v642_v47 = vpop.f32.mrf.mxu0 }
 0x2f0   :  { %v643_v48 = vadd.f32 %v642_v47, %v625_v45 }
 0x2f2   :  { %v648_v49 = vadd.f32 %v647_v46, %v643_v48 }
 0x2f4   :  { %v652_v50 = vmin.f32 %v648_v49, 0.0  ;;  %vm650_vm9 = vcmp.gt.f32.partialorder %v648_v49, 0.0 }
 0x2f6   :  { %v654_v54 = vmul.f32 1.442695, %v652_v50  ;;  %v388_v55 = vpop.f32.mrf.mxu2 }
 0x2f7   :  { %v389_v57 = vadd.f32 %v388_v55, %v371_v28  ;;  %v644_v58 = vpop.f32.mrf.mxu0 }
 0x2f8   :  { %1577 = vpow2.f32 %v654_v54  ;;  %v645_v59 = vadd.f32 %v644_v58, %v627_v56 }
 0x2f9   :  { %v394_v60 = vadd.f32 %v393_v51, %v389_v57 }
 0x2fa   :  { %v649_v61 = vadd.f32 %v647_v46, %v645_v59 }
 0x2fb   :  { %v398_v62 = vmin.f32 %v394_v60, 0.0  ;;  %vm396_vm10 = vcmp.gt.f32.partialorder %v394_v60, 0.0 }
 0x2fc   :  { %v653_v35 = vmin.f32 %v649_v61, 0.0  ;;  %vm651_vm11 = vcmp.gt.f32.partialorder %v649_v61, 0.0 }
 0x2fd   :  { %v400_v0 = vmul.f32 1.442695, %v398_v62 }
 0x2fe   :  { %v1578_v1 = vpop.eup %1577  ;;  %v656_v2 = vmul.f32 1.442695, %v653_v35  ;;  %v390_v3 = vpop.f32.mrf.mxu2 }
 0x2ff   :  { %1579 = vpow2.f32 %v400_v0  ;;  %v391_v30 = vadd.f32 %v390_v3, %v373_v40  ;;  %v1348_v4 = vadd.f32 -1.0, %v1578_v1  ;;  %v1017_v40 = vpack.c.bf16 %v1985_v63, %v1985_v63 }
 0x300   :  { %1581 = vpow2.f32 %v656_v2 }
 0x301   :  { %v395_v5 = vadd.f32 %v393_v51, %v391_v30  ;;  %v660_v7 = vsel %vm650_vm9, %v648_v49, %v1348_v4 }
 0x302   :  { %v1032_v8 = vmul.f32 %v1031_v25, %v660_v7 }
 0x303   :  { %v399_v10 = vmin.f32 %v395_v5, 0.0  ;;  %vm397_vm12 = vcmp.gt.f32.partialorder %v395_v5, 0.0 }
 0x304   :  { %1034 = vadd.xlane.f32.xlu2 %v1032_v8 }
 0x305   :  { %v1580_v11 = vpop.eup %1579  ;;  %v402_v13 = vmul.f32 1.442695, %v399_v10 }
 0x306   :  { %v1582_v15 = vpop.eup %1581  ;;  %v1281_v16 = vadd.f32 -1.0, %v1580_v11 }
 0x307   :  { %1583 = vpow2.f32 %v402_v13  ;;  %v1349_v17 = vadd.f32 -1.0, %v1582_v15 }
 0x308   :  { %v406_v18 = vsel %vm396_vm10, %v394_v60, %v1281_v16 }
 0x309   :  { %v661_v19 = vsel %vm651_vm11, %v649_v61, %v1349_v17  ;;  %v777_v21 = vmul.f32 %v776_v14, %v406_v18 }
 0x30a   :  { %v1991_v22 = vpack.c.bf16 %v661_v19, %v660_v7  ;;  %v1033_v29 = vmul.f32 %v1031_v25, %v661_v19 }
 0x30b   :  { %779 = vadd.xlane.f32.xlu0 %v777_v21 }
 0x30c   :  { %755 = vmatmul.bf16.vlgmr.msra.gmra.mxu2 %v1991_v22 }
 0x30d   :  { %v1584_v23 = vpop.eup %1583 }
 0x30e   :  { %v1282_v24 = vadd.f32 -1.0, %v1584_v23 }
 0x310   :  { %v407_v26 = vsel %vm397_vm12, %v395_v5, %v1282_v24 }
 0x311   :  { %v778_v27 = vmul.f32 %v776_v14, %v407_v26  ;;  %v823_v28 = vpack.c.bf16 %v407_v26, %v406_v18 }
 0x313   :  { %781 = vadd.xlane.f32.xlu1 %v778_v27  ;;  %880 = vmatmul.bf16.vlgmr.msra.gmra.mxu0 %v823_v28 }
 0x314   :  { %1010 = vmatmul.bf16.vlgmr.msrb.gmra.mxu1 %v823_v28  ;;  %1036 = vadd.xlane.f32.xlu0 %v1033_v29 }
 0x377   :  { %v1035_v51 = vpop.xlane.xlu2 %1034 }
 0x37e   :  { %v780_v43 = vpop.xlane.xlu0 %779 }
 0x386   :  { %v782_v46 = vpop.xlane.xlu1 %781 }
 0x387   :  { %v1037_v54 = vpop.xlane.xlu0 %1036 }
 0x38f   :  { %v756_v31 = vpop.f32.mrf.mxu2 }
 0x391   :  { %v1011_v32 = vpop.f32.mrf.mxu1 }
 0x397   :  { %v758_v33 = vpop.f32.mrf.mxu2 }
 0x398   :  { %v761_v36 = vpack.c.bf16 %v758_v33, %v756_v31 }
 0x399   :  { %v1013_v37 = vpop.f32.mrf.mxu1 }
 0x39a   :  { %v1016_v38 = vpack.c.bf16 %v1013_v37, %v1011_v32  ;;  %770 = vmatpush.bf16.xpose.msrb.mxu3 %v761_v36 }
 0x39c   :  { %1025 = vmatpush.bf16.xpose.msrb.mxu2 %v1016_v38  ;;  %1150 = vmatpush.bf16.msrb.mxu0 %v1016_v38  ;;  %v1546_v38 = vld [vmem:[#allocation13 + $0xf0] sm:$0xff] }
 0x3a1   :  { %771 = vmatmul.bf16.vlgmr.msrb.gmra.mxu3 %v762_v39  ;;  %v1544_v39 = vld [vmem:[#allocation13 + $0xe0] sm:$0xff] }
 0x3a2   :  { %896 = vmatpush.bf16.msra.mxu3 %v761_v36 }
 0x3a3   :  { %1026 = vmatmul.bf16.vlgmr.msrb.gmra.mxu2 %v1017_v40  ;;  %v1542_v40 = vld [vmem:[#allocation13 + $0xd0] sm:$0xff] }
 0x424   :  { %v772_v44 = vpop.f32.mrf.mxu3 }
 0x425   :  { %v783_v45 = vperm.slane %v772_v44, 0  ;;  %v1540_v44 = vld [vmem:[#allocation13 + $0xc0] sm:$0xff] }
 0x426   :  { %v1027_v47 = vpop.f32.mrf.mxu2 }
 0x427   :  { %v784_v48 = vadd.f32 %v783_v45, %v780_v43  ;;  %v785_v49 = vadd.f32 %v783_v45, %v782_v46  ;;  %v1038_v50 = vperm.slane %v1027_v47, 0  ;;  %v1541_v43 = vld [vmem:[#allocation13 + $0xc8] sm:$0xff] }
 0x429   :  { %v788_v55 = vmul.f32 0.2, %v784_v48  ;;  %v789_v56 = vmul.f32 0.2, %v785_v49  ;;  %v1039_v57 = vadd.f32 %v1038_v50, %v1035_v51  ;;  %v1040_v58 = vadd.f32 %v1038_v50, %v1037_v54 }
 0x42a   :  { %vm787_vm13 = vcmp.gt.f32.partialorder %v785_v49, 0.0  ;;  %vm786_vm14 = vcmp.gt.f32.partialorder %v784_v48, 0.0 }
 0x42b   :  { %v1043_v59 = vmul.f32 0.2, %v1039_v57  ;;  %vm1041_vm15 = vcmp.gt.f32.partialorder %v1039_v57, 0.0  ;;  %v791_v60 = vsel %vm787_vm13, %v785_v49, %v789_v56  ;;  %v1044_v61 = vmul.f32 0.2, %v1040_v58 }
 0x42c   :  { %v774_v62 = vpop.f32.mrf.mxu3  ;;  %v793_v35 = vadd.f32 %v791_v60, %v1944_v52  ;;  %v790_v0 = vsel %vm786_vm14, %v784_v48, %v788_v55  ;;  %vm1042_vm0 = vcmp.gt.f32.partialorder %v1040_v58, 0.0 }
 0x42d   :  { %v1045_v1 = vsel %vm1041_vm15, %v1039_v57, %v1043_v59  ;;  %v792_v2 = vadd.f32 %v790_v0, %v1946_v53  ;;  %v1046_v7 = vsel %vm1042_vm0, %v1040_v58, %v1044_v61  ;;  %v1547_v53 = vld [vmem:[#allocation13 + $0xf8] sm:$0xff]  ;;  %v881_v0 = vpop.f32.mrf.mxu0 }
 0x42e   :  { %v1047_v3 = vadd.f32 %v1045_v1, %v1952_v6  ;;  %v797_v25 = vsel %vm283_vm2, %v793_v35, -inf  ;;  %v1029_v30 = vpop.f32.mrf.mxu2  ;;  %v1048_v52 = vadd.f32 %v1046_v7, %v1956_v12  ;;  %1126 = vmatpush.bf16.msrb.mxu3 %v1547_v53  ;;  %v903_v1 = vperm.slane %v1988_v9, 2 }
 0x42f   :  { %798 = vmax.xlane.f32.xlu2 %v797_v25  ;;  %v794_v4 = vsel %vm283_vm2, %v792_v2, -inf }
 0x430   :  { %v1049_v5 = vsel %vm283_vm2, %v1047_v3, -inf  ;;  %795 = vmax.xlane.f32.xlu1 %v794_v4  ;;  %v1052_v8 = vsel %vm283_vm2, %v1048_v52, -inf }
 0x431   :  { %1050 = vmax.xlane.f32.xlu0 %v1049_v5 }
 0x432   :  { %1127 = vmatpush.bf16.msrb.mxu3 %v1546_v38 }
 0x435   :  { %v883_v4 = vpop.f32.mrf.mxu0 }
 0x438   :  { %1053 = vmax.xlane.f32.xlu1 %v1052_v8 }
 0x4a2   :  { %v799_v10 = vpop.xlane.xlu2 %798 }
 0x4a3   :  { %v801_v6 = vsub.f32 %v793_v35, %v799_v10  ;;  %v796_v11 = vpop.xlane.xlu1 %795 }
 0x4a4   :  { %v1051_v13 = vpop.xlane.xlu0 %1050  ;;  %v800_v14 = vsub.f32 %v792_v2, %v796_v11 }
 0x4a5   :  { %v1055_v15 = vsub.f32 %v1047_v3, %v1051_v13  ;;  %v804_v16 = vmul.f32 1.442695, %v801_v6  ;;  %v1157_v13 = vperm.slane %v1985_v63, 2 }
 0x4a6   :  { %v802_v17 = vmul.f32 1.442695, %v800_v14 }
 0x4a7   :  { %v1057_v18 = vmul.f32 1.442695, %v1055_v15  ;;  %1585 = vpow2.f32 %v804_v16 }
 0x4a8   :  { %1587 = vpow2.f32 %v802_v17 }
 0x4a9   :  { %1589 = vpow2.f32 %v1057_v18 }
 0x4ab   :  { %v1054_v19 = vpop.xlane.xlu1 %1053 }
 0x4ac   :  { %v1056_v21 = vsub.f32 %v1048_v52, %v1054_v19 }
 0x4ad   :  { %v1586_v12 = vpop.eup %1585 }
 0x4ae   :  { %v1588_v23 = vpop.eup %1587  ;;  %v1059_v24 = vmul.f32 1.442695, %v1056_v21  ;;  %v807_v26 = vmul.f32 %v1586_v12, %v1971_v41 }
 0x4af   :  { %v1590_v27 = vpop.eup %1589  ;;  %v806_v28 = vmul.f32 %v1588_v23, %v1960_v20  ;;  %v1545_v20 = vld [vmem:[#allocation13 + $0xe8] sm:$0xff] }
 0x4b0   :  { %1591 = vpow2.f32 %v1059_v24  ;;  %v811_v29 = vsel %vm283_vm2, %v807_v26, 0.0  ;;  %v1061_v31 = vmul.f32 %v1590_v27, %v1967_v34  ;;  %1128 = vmatpush.bf16.msrb.mxu3 %v1545_v20  ;;  %v1543_v34 = vld [vmem:[#allocation13 + $0xd8] sm:$0xff] }
 0x4b1   :  { %812 = vadd.xlane.f32.xlu0 %v811_v29  ;;  %v808_v32 = vsel %vm283_vm2, %v806_v28, 0.0 }
 0x4b2   :  { %v1063_v33 = vsel %vm283_vm2, %v1061_v31, 0.0  ;;  %809 = vadd.xlane.f32.xlu2 %v808_v32 }
 0x4b3   :  { %1064 = vadd.xlane.f32.xlu1 %v1063_v33 }
 0x4b4   :  { %1129 = vmatpush.bf16.msrb.mxu3 %v1544_v39 }
 0x4b6   :  { %v1592_v36 = vpop.eup %1591 }
 0x4b7   :  { %v1062_v37 = vmul.f32 %v1592_v36, %v1973_v42 }
 0x4b8   :  { %1130 = vmatpush.bf16.msrb.mxu3 %v1543_v34 }
 0x4b9   :  { %v1066_v41 = vsel %vm283_vm2, %v1062_v37, 0.0 }
 0x4ba   :  { %1067 = vadd.xlane.f32.xlu2 %v1066_v41 }
 0x4bc   :  { %1131 = vmatpush.bf16.msrb.mxu3 %v1542_v40 }
 0x4c0   :  { %1132 = vmatpush.bf16.msrb.mxu3 %v1541_v43 }
 0x4c4   :  { %1133 = vmatpush.bf16.msrb.mxu3 %v1540_v44 }
 0x524   :  { %v813_v45 = vpop.xlane.xlu0 %812 }
 0x525   :  { %vm815_vm1 = vcmp.gt.f32.partialorder %v813_v45, 0.0  ;;  %v810_v42 = vpop.xlane.xlu2 %809 }
 0x526   :  { %v817_v46 = vsel %vm815_vm1, %v813_v45, 1.0  ;;  %vm814_vm3 = vcmp.gt.f32.partialorder %v810_v42, 0.0  ;;  %v1065_v47 = vpop.xlane.xlu1 %1064 }
 0x527   :  { %1593 = vrcp.f32 %v817_v46  ;;  %v816_v48 = vsel %vm814_vm3, %v810_v42, 1.0  ;;  %vm1069_vm4 = vcmp.gt.f32.partialorder %v1065_v47, 0.0 }
 0x528   :  { %1595 = vrcp.f32 %v816_v48  ;;  %v1071_v49 = vsel %vm1069_vm4, %v1065_v47, 1.0 }
 0x529   :  { %1597 = vrcp.f32 %v1071_v49 }
 0x52d   :  { %v1594_v50 = vpop.eup %1593  ;;  %v1068_v51 = vpop.xlane.xlu2 %1067 }
 0x52e   :  { %v1596_v54 = vpop.eup %1595  ;;  %v821_v55 = vmul.f32 %v1594_v50, %v807_v26  ;;  %vm1070_vm5 = vcmp.gt.f32.partialorder %v1068_v51, 0.0 }
 0x52f   :  { %v820_v56 = vmul.f32 %v1596_v54, %v806_v28  ;;  %v1072_v57 = vsel %vm1070_vm5, %v1068_v51, 1.0  ;;  %v1598_v59 = vpop.eup %1597 }
 0x530   :  { %1599 = vrcp.f32 %v1072_v57  ;;  %v1075_v61 = vmul.f32 %v1598_v59, %v1061_v31 }
 0x531   :  { %v822_v58 = vpack.c.bf16 %v821_v55, %v820_v56 }
 0x533   :  { %1414 = vmatmul.msk.bf16.vlgmr.msra.gmra.mxu3 %vm283_vm2, %v822_v58 }
 0x536   :  { %v1600_v60 = vpop.eup %1599 }
 0x537   :  { %v1076_v62 = vmul.f32 %v1600_v60, %v1062_v37 }
 0x539   :  { %v1077_v35 = vpack.c.bf16 %v1076_v62, %v1075_v61 }
 0x53b   :  { %1481 = vmatmul.msk.bf16.vlgmr.msrb.gmra.mxu0 %vm283_vm2, %v1077_v35 }
 0x543   :  { %1134 = vmatmul.bf16.vlgmr.msrb.gmra.mxu3 %v1991_v22 }
 0x5b6   :  { %v898_v2 = vpop.f32.mrf.mxu3 }
 0x5b7   :  { %v899_v3 = vadd.f32 %v898_v2, %v881_v0 }
 0x5b8   :  { %v1152_v10 = vpop.f32.mrf.mxu0 }
 0x5b9   :  { %v904_v25 = vadd.f32 %v903_v1, %v899_v3 }
 0x5bb   :  { %v908_v30 = vmin.f32 %v904_v25, 0.0  ;;  %vm906_vm2 = vcmp.gt.f32.partialorder %v904_v25, 0.0 }
 0x5bd   :  { %v910_v5 = vmul.f32 1.442695, %v908_v30 }
 0x5be   :  { %v900_v7 = vpop.f32.mrf.mxu3 }
 0x5bf   :  { %1601 = vpow2.f32 %v910_v5  ;;  %v901_v52 = vadd.f32 %v900_v7, %v883_v4 }
 0x5c0   :  { %v1154_v12 = vpop.f32.mrf.mxu0 }
 0x5c1   :  { %v905_v8 = vadd.f32 %v903_v1, %v901_v52 }
 0x5c3   :  { %v909_v53 = vmin.f32 %v905_v8, 0.0  ;;  %vm907_vm6 = vcmp.gt.f32.partialorder %v905_v8, 0.0 }
 0x5c5   :  { %v1602_v6 = vpop.eup %1601  ;;  %v912_v11 = vmul.f32 1.442695, %v909_v53 }
 0x5c6   :  { %v1415_v22 = vadd.f32 -1.0, %v1602_v6  ;;  %v1135_v14 = vpop.f32.mrf.mxu3 }
 0x5c7   :  { %1603 = vpow2.f32 %v912_v11  ;;  %v1153_v9 = vadd.f32 %v1152_v10, %v1135_v14 }
 0x5c8   :  { %v916_v15 = vsel %vm906_vm2, %v904_v25, %v1415_v22 }
 0x5c9   :  { %v1158_v16 = vadd.f32 %v1157_v13, %v1153_v9  ;;  %1174 = vst [vmem:[#allocation15] sm:$0xff] %v916_v15 }
 0x5cb   :  { %v1162_v17 = vmin.f32 %v1158_v16, 0.0  ;;  %vm1160_vm7 = vcmp.gt.f32.partialorder %v1158_v16, 0.0 }
 0x5cd   :  { %v1604_v18 = vpop.eup %1603  ;;  %v1164_v19 = vmul.f32 1.442695, %v1162_v17 }
 0x5ce   :  { %v1416_v21 = vadd.f32 -1.0, %v1604_v18  ;;  %v1137_v63 = vpop.f32.mrf.mxu3 }
 0x5cf   :  { %1605 = vpow2.f32 %v1164_v19  ;;  %v1155_v23 = vadd.f32 %v1154_v12, %v1137_v63 }
 0x5d0   :  { %v917_v24 = vsel %vm907_vm6, %v905_v8, %v1416_v21 }
 0x5d1   :  { %v1159_v26 = vadd.f32 %v1157_v13, %v1155_v23  ;;  %1175 = vst [vmem:[#allocation15 + $0x8] sm:$0xff] %v917_v24 }
 0x5d2   :  { %1201 = dma.vmem_to_hbm [thread:$0]  %s1194_s18, 256, %s1196_s19, [#allocation16], %s1838_s13, %s1838_s13, %s1839_s14  }
 0x5d3   :  { %v1163_v27 = vmin.f32 %v1159_v26, 0.0  ;;  %vm1161_vm8 = vcmp.gt.f32.partialorder %v1159_v26, 0.0 }
 0x5d5   :  { %v1606_v28 = vpop.eup %1605  ;;  %v1166_v29 = vmul.f32 1.442695, %v1163_v27 }
 0x5d6   :  { %v1482_v31 = vadd.f32 -1.0, %v1606_v28 }
 0x5d7   :  { %1607 = vpow2.f32 %v1166_v29 }
 0x5d8   :  { %v1170_v32 = vsel %vm1160_vm7, %v1158_v16, %v1482_v31 }
 0x5d9   :  { %1172 = vst [vmem:[#allocation14] sm:$0xff] %v1170_v32 }
 0x5dd   :  { %v1608_v33 = vpop.eup %1607 }
 0x5de   :  { %v1483_v36 = vadd.f32 -1.0, %v1608_v33 }
 0x5e0   :  { %v1171_v37 = vsel %vm1161_vm8, %v1159_v26, %v1483_v36 }
 0x5e1   :  { %1173 = vst [vmem:[#allocation14 + $0x8] sm:$0xff] %v1171_v37 }
 0x5e2   :  { %1188 = dma.vmem_to_hbm [thread:$0]  %s1181_s20, 256, %s1183_s23, [#allocation4], %s1838_s13, %s1838_s13, %s1839_s14  }
 0x5e3   :  { %1833 = dma.done.wait [#allocation4], 256  }
 0x5e4   :  { %1834 = vsyncadd [#allocation4], 4294967040 }
 0x5e5   :  { %1835 = dma.done.wait [#allocation16], 256  }
 0x5e6   :  { %1836 = vsyncadd [#allocation16], 4294967040 }
 0x5e7   :  { %1210 = vsyncpa [#allocation3], 1 }
 0x5e8   :  { %1211 = vsyncpa [#allocation6], 1 }
 0x5e9   :  { %1212 = vsyncpa [#allocation9], 1 }
 0x5ea   :  { %1213 = vsyncpa [#allocation12], 1 }
 0x5eb   :  { %1214 = vsyncpa [#allocation4], 1 }
 0x5ec   :  { %1215 = vsyncpa [#allocation16], 1 }

</bundles_post_ra>
